<compile_context>
chip_gen: v6e
topology: v6e:2x2x1
jax: 0.10.0
libtpu: 0.0.40
codegen_flags: <defaults>
</compile_context>

<pallas_src>
import functools

import numpy as np
import jax
import jax.numpy as jnp
from jax.experimental import pallas as pl
from jax.experimental.pallas import tpu as pltpu


def _round_up(x: int, m: int) -> int:
    return ((x + m - 1) // m) * m


def _fused_mlp_kernel(*refs, num_layers: int, apply_final_act: bool,
                      neg_slope: float, compute_dtype):
    """refs = (x_ref, w0, b0, w1, b1, ..., w_{L-1}, b_{L-1}, o_ref).

    All weights/biases are VMEM-resident full blocks (constant index_map); only
    the batch tile of x streams.  MXU does the dots (f32 accumulation), VPU does
    bias-add + LeakyReLU, and only the final (lane-dense) activation is written
    back to HBM.  Intermediates never leave vregs/VMEM.
    """
    x_ref = refs[0]
    o_ref = refs[-1]
    wb_refs = refs[1:-1]

    h = x_ref[...]
    for layer in range(num_layers):
        w = wb_refs[2 * layer][...]            # already compute_dtype, lane-padded
        b = wb_refs[2 * layer + 1][...]        # f32, lane-padded
        h = jnp.dot(h.astype(compute_dtype), w,
                    preferred_element_type=jnp.float32) + b
        if layer < num_layers - 1 or apply_final_act:
            # LeakyReLU(negative_slope=0.01), PyTorch default.
            h = jnp.where(h > 0, h, neg_slope * h)
    o_ref[...] = h.astype(o_ref.dtype)


def mlp_forward(x, params, disable_final_activation=True, *,
                neg_slope: float = 0.01,
                block_batch: int = 2048,
                compute_dtype=jnp.float32,
                lane_pad: int = 128,
                slice_output: bool = True):
    """Fused MLP forward: one pallas_call for the whole stack of Linear(+LeakyReLU).

    x: (B, Cin) float32; params: list of (W (Cin_i, Cout_i), b (1, Cout_i)).
    """
    B, Cin = x.shape
    num_layers = len(params)
    Cout = params[-1][0].shape[1]

    # ---- Batch tiling (no wrapper pad / slice) -------------------------------
    # TB must be a multiple of 8 (f32 sublane rule) or equal the full batch dim.
    # Non-divisible grids are fine: the boundary block's reads/writes are masked
    # by the Pallas pipeline, and each garbage tail row only produces a garbage
    # output row that is never written back.
    if B <= block_batch:
        if B >= 16 and B % 8 == 0:
            # Split into >=2 tiles so v7x's two TensorCores both get work
            # (neutral on v5e/v6e which have a single TC).
            TB = _round_up(pl.cdiv(B, 2), 8)
        else:
            TB = B                      # full-dim block is always legal
    else:
        TB = block_batch                # multiple of 8; tail = partial block
    grid = (pl.cdiv(B, TB),)

    # ---- Lane-pad weights/biases so every layer is 128-lane dense ------------
    # Zero padding keeps the valid columns exact and makes padded columns 0.
    # Weights are tiny (<< VMEM), so this one-time pad is negligible traffic.
    padded_params = []
    prev = Cin                          # x's own columns are NOT padded
    for (w, b) in params:
        in_dim, out_dim = w.shape
        out_pad = _round_up(out_dim, lane_pad)
        w_p = jnp.pad(w.astype(compute_dtype),
                      ((0, prev - in_dim), (0, out_pad - out_dim)))
        b_p = jnp.pad(b.astype(jnp.float32), ((0, 0), (0, out_pad - out_dim)))
        padded_params.append((w_p, b_p))
        prev = out_pad
    out_pad_last = prev

    # ---- BlockSpecs -----------------------------------------------------------
    # Activations tile over batch; weights/biases use constant index_maps so they
    # stay VMEM-resident across the whole grid (no re-DMA per batch tile).
    # NOTE: with <64 KB of weights, pipeline_mode=pl.Buffered(1) on the weight
    # specs would save a negligible second buffer; intentionally skipped.
    flat_params = []
    in_specs = [pl.BlockSpec((TB, Cin), lambda i: (i, 0))]
    for w_p, b_p in padded_params:
        flat_params.extend((w_p, b_p))
        in_specs.append(pl.BlockSpec(w_p.shape, lambda i: (0, 0)))
        in_specs.append(pl.BlockSpec(b_p.shape, lambda i: (0, 0)))
    out_specs = pl.BlockSpec((TB, out_pad_last), lambda i: (i, 0))

    # ---- VMEM budget: raise the scoped limit only if the default (v5e: 16 MiB)
    # could be exceeded by the double-buffered tiles + intermediates. -----------
    max_w = max([Cin] + [w_p.shape[1] for w_p, _ in padded_params])
    weight_bytes = sum(int(w_p.size) * w_p.dtype.itemsize +
                       int(b_p.size) * 4 for w_p, b_p in padded_params)
    est = (2 * TB * Cin + 2 * TB * out_pad_last + 4 * TB * max_w) * 4 + weight_bytes
    vmem_limit = None
    if est > 12 * (1 << 20):
        vmem_limit = min(max(2 * est, 32 * (1 << 20)), 64 * (1 << 20))

    cp_kwargs = dict(dimension_semantics=("parallel",))
    if vmem_limit is not None:
        cp_kwargs["vmem_limit_bytes"] = int(vmem_limit)

    kernel = functools.partial(
        _fused_mlp_kernel,
        num_layers=num_layers,
        apply_final_act=not disable_final_activation,
        neg_slope=neg_slope,
        compute_dtype=compute_dtype,
    )

    out = pl.pallas_call(
        kernel,
        out_shape=jax.ShapeDtypeStruct((B, out_pad_last), x.dtype),
        grid=grid,
        in_specs=in_specs,
        out_specs=out_specs,
        compiler_params=pltpu.CompilerParams(**cp_kwargs),
    )(x, *flat_params)

    if slice_output and out_pad_last != Cout:
        # Production consumers should instead take the lane-dense (B, out_pad_last)
        # slab directly and ignore columns [Cout:], avoiding this extra copy.
        out = out[:, :Cout]
    return out


def init_mlp_params(key, channel_list):
    """Deterministic init matching nn.Linear's default (uniform +-1/sqrt(fan_in))."""
    params = []
    for i in range(len(channel_list) - 1):
        cin, cout = channel_list[i], channel_list[i + 1]
        key, kw, kb = jax.random.split(key, 3)
        bound = 1.0 / float(np.sqrt(cin))
        w = jax.random.uniform(kw, (cin, cout), jnp.float32, -bound, bound)
        b = jax.random.uniform(kb, (1, cout), jnp.float32, -bound, bound)
        params.append((w, b))
    return params


def mlp_reference_np(x, params, disable_final_activation=True):
    """Float64 numpy reference (avoids XLA TPU matmul-precision ambiguity)."""
    h = np.asarray(x, np.float64)
    n = len(params)
    for i, (w, b) in enumerate(params):
        h = h @ np.asarray(w, np.float64) + np.asarray(b, np.float64)
        if not (i == n - 1 and disable_final_activation):
            h = np.where(h > 0, h, 0.01 * h)
    return h


if __name__ == "__main__":
    key = jax.random.PRNGKey(0)
    channel_list = [32, 64, 48, 16]   # 3 Linear layers; last has no activation
    batch = 8

    kx, kp = jax.random.split(key)
    x = jax.random.normal(kx, (batch, channel_list[0]), jnp.float32)
    params = init_mlp_params(kp, channel_list)

    out = mlp_forward(x, params)
    out = jax.block_until_ready(out)

    ref = mlp_reference_np(np.asarray(x), [(np.asarray(w), np.asarray(b)) for w, b in params])
    assert out.shape == (batch, channel_list[-1])
    assert np.allclose(np.asarray(out), ref, atol=1e-4, rtol=1e-4)
    print("KERNEL_OK")
</pallas_src>

<mosaic_0001>
module attributes {stable_mosaic.version = 11 : i64} {
  func.func @_fused_mlp_kernel(%arg0: i32, %arg1: memref<8x32xf32, #tpu.memory_space<vmem>>, %arg2: memref<32x128xf32, #tpu.memory_space<vmem>>, %arg3: memref<1x128xf32, #tpu.memory_space<vmem>>, %arg4: memref<128x128xf32, #tpu.memory_space<vmem>>, %arg5: memref<1x128xf32, #tpu.memory_space<vmem>>, %arg6: memref<128x128xf32, #tpu.memory_space<vmem>>, %arg7: memref<1x128xf32, #tpu.memory_space<vmem>>, %arg8: memref<8x128xf32, #tpu.memory_space<vmem>>) attributes {dimension_semantics = [#tpu.dimension_semantics<parallel>], iteration_bounds = array<i64: 1>, scalar_prefetch = 0 : i64, scratch_operands = 0 : i64, tpu.core_type = #tpu.core_type<tc>, window_params = [{transform_indices = @transform_0, window_bounds = array<i64: 8, 32>}, {pipeline_mode = #tpu.pipeline_mode<synchronous>, transform_indices = @transform_1, window_bounds = array<i64: 32, 128>}, {pipeline_mode = #tpu.pipeline_mode<synchronous>, transform_indices = @transform_2, window_bounds = array<i64: 1, 128>}, {pipeline_mode = #tpu.pipeline_mode<synchronous>, transform_indices = @transform_3, window_bounds = array<i64: 128, 128>}, {pipeline_mode = #tpu.pipeline_mode<synchronous>, transform_indices = @transform_4, window_bounds = array<i64: 1, 128>}, {pipeline_mode = #tpu.pipeline_mode<synchronous>, transform_indices = @transform_5, window_bounds = array<i64: 128, 128>}, {pipeline_mode = #tpu.pipeline_mode<synchronous>, transform_indices = @transform_6, window_bounds = array<i64: 1, 128>}, {transform_indices = @transform_7, window_bounds = array<i64: 8, 128>}]} {
    %c0 = arith.constant 0 : index
    %c0_0 = arith.constant 0 : index
    %0 = vector.load %arg1[%c0, %c0_0] : memref<8x32xf32, #tpu.memory_space<vmem>>, vector<8x32xf32>
    %c0_1 = arith.constant 0 : index
    %c0_2 = arith.constant 0 : index
    %1 = vector.load %arg2[%c0_1, %c0_2] : memref<32x128xf32, #tpu.memory_space<vmem>>, vector<32x128xf32>
    %c0_3 = arith.constant 0 : index
    %c0_4 = arith.constant 0 : index
    %2 = vector.load %arg3[%c0_3, %c0_4] : memref<1x128xf32, #tpu.memory_space<vmem>>, vector<1x128xf32>
    %cst = arith.constant dense<0.000000e+00> : vector<8x128xf32>
    %3 = tpu.matmul %0, %1, %cst {dimension_numbers = #tpu.dot_dimension_numbers<[1], [0], [0], [1], [0, 0, 1, 1], [], []>} : vector<8x32xf32>, vector<32x128xf32>, vector<8x128xf32> -> vector<8x128xf32>
    %4 = vector.broadcast %2 : vector<1x128xf32> to vector<8x128xf32>
    %5 = arith.addf %3, %4 : vector<8x128xf32>
    %cst_5 = arith.constant 0.000000e+00 : f32
    %6 = vector.broadcast %cst_5 : f32 to vector<8x128xf32>
    %7 = arith.cmpf ogt, %5, %6 : vector<8x128xf32>
    %cst_6 = arith.constant 0.00999999977 : f32
    %8 = vector.broadcast %cst_6 : f32 to vector<8x128xf32>
    %9 = arith.mulf %8, %5 : vector<8x128xf32>
    %10 = arith.select %7, %5, %9 : vector<8x128xi1>, vector<8x128xf32>
    %c0_7 = arith.constant 0 : index
    %c0_8 = arith.constant 0 : index
    %11 = vector.load %arg4[%c0_7, %c0_8] : memref<128x128xf32, #tpu.memory_space<vmem>>, vector<128x128xf32>
    %c0_9 = arith.constant 0 : index
    %c0_10 = arith.constant 0 : index
    %12 = vector.load %arg5[%c0_9, %c0_10] : memref<1x128xf32, #tpu.memory_space<vmem>>, vector<1x128xf32>
    %cst_11 = arith.constant dense<0.000000e+00> : vector<8x128xf32>
    %13 = tpu.matmul %10, %11, %cst_11 {dimension_numbers = #tpu.dot_dimension_numbers<[1], [0], [0], [1], [0, 0, 1, 1], [], []>} : vector<8x128xf32>, vector<128x128xf32>, vector<8x128xf32> -> vector<8x128xf32>
    %14 = vector.broadcast %12 : vector<1x128xf32> to vector<8x128xf32>
    %15 = arith.addf %13, %14 : vector<8x128xf32>
    %cst_12 = arith.constant 0.000000e+00 : f32
    %16 = vector.broadcast %cst_12 : f32 to vector<8x128xf32>
    %17 = arith.cmpf ogt, %15, %16 : vector<8x128xf32>
    %cst_13 = arith.constant 0.00999999977 : f32
    %18 = vector.broadcast %cst_13 : f32 to vector<8x128xf32>
    %19 = arith.mulf %18, %15 : vector<8x128xf32>
    %20 = arith.select %17, %15, %19 : vector<8x128xi1>, vector<8x128xf32>
    %c0_14 = arith.constant 0 : index
    %c0_15 = arith.constant 0 : index
    %21 = vector.load %arg6[%c0_14, %c0_15] : memref<128x128xf32, #tpu.memory_space<vmem>>, vector<128x128xf32>
    %c0_16 = arith.constant 0 : index
    %c0_17 = arith.constant 0 : index
    %22 = vector.load %arg7[%c0_16, %c0_17] : memref<1x128xf32, #tpu.memory_space<vmem>>, vector<1x128xf32>
    %cst_18 = arith.constant dense<0.000000e+00> : vector<8x128xf32>
    %23 = tpu.matmul %20, %21, %cst_18 {dimension_numbers = #tpu.dot_dimension_numbers<[1], [0], [0], [1], [0, 0, 1, 1], [], []>} : vector<8x128xf32>, vector<128x128xf32>, vector<8x128xf32> -> vector<8x128xf32>
    %24 = vector.broadcast %22 : vector<1x128xf32> to vector<8x128xf32>
    %25 = arith.addf %23, %24 : vector<8x128xf32>
    %c0_19 = arith.constant 0 : index
    %c0_20 = arith.constant 0 : index
    %26 = vector.load %arg8[%c0_19, %c0_20] : memref<8x128xf32, #tpu.memory_space<vmem>>, vector<8x128xf32>
    tpu.vector_store %arg8[%c0_19, %c0_20], %25 {strides = array<i32>} : memref<8x128xf32, #tpu.memory_space<vmem>>, vector<8x128xf32>,
    return
  }
  func.func @transform_0(%arg0: i32) -> (i32, i32) {
    %c0_i32 = arith.constant 0 : i32
    %c0_i32_0 = arith.constant 0 : i32
    return %arg0, %c0_i32 : i32, i32
  }
  func.func @transform_1(%arg0: i32) -> (i32, i32) {
    %c0_i32 = arith.constant 0 : i32
    %c0_i32_0 = arith.constant 0 : i32
    %c0_i32_1 = arith.constant 0 : i32
    return %c0_i32, %c0_i32_0 : i32, i32
  }
  func.func @transform_2(%arg0: i32) -> (i32, i32) {
    %c0_i32 = arith.constant 0 : i32
    %c0_i32_0 = arith.constant 0 : i32
    %c0_i32_1 = arith.constant 0 : i32
    return %c0_i32, %c0_i32_0 : i32, i32
  }
  func.func @transform_3(%arg0: i32) -> (i32, i32) {
    %c0_i32 = arith.constant 0 : i32
    %c0_i32_0 = arith.constant 0 : i32
    %c0_i32_1 = arith.constant 0 : i32
    return %c0_i32, %c0_i32_0 : i32, i32
  }
  func.func @transform_4(%arg0: i32) -> (i32, i32) {
    %c0_i32 = arith.constant 0 : i32
    %c0_i32_0 = arith.constant 0 : i32
    %c0_i32_1 = arith.constant 0 : i32
    return %c0_i32, %c0_i32_0 : i32, i32
  }
  func.func @transform_5(%arg0: i32) -> (i32, i32) {
    %c0_i32 = arith.constant 0 : i32
    %c0_i32_0 = arith.constant 0 : i32
    %c0_i32_1 = arith.constant 0 : i32
    return %c0_i32, %c0_i32_0 : i32, i32
  }
  func.func @transform_6(%arg0: i32) -> (i32, i32) {
    %c0_i32 = arith.constant 0 : i32
    %c0_i32_0 = arith.constant 0 : i32
    %c0_i32_1 = arith.constant 0 : i32
    return %c0_i32, %c0_i32_0 : i32, i32
  }
  func.func @transform_7(%arg0: i32) -> (i32, i32) {
    %c0_i32 = arith.constant 0 : i32
    %c0_i32_0 = arith.constant 0 : i32
    return %arg0, %c0_i32 : i32, i32
  }
}

</mosaic_0001>

<bundles_post_ra>
// kernel: tpu_custom_call.1
= control target key start
LH: loop header
LB: loop body
LE: loop exit
PB: predicated region body
PF: predicated region fallthrough
CT: control target
= control target key end

     0   :  { %12 = vsyncpa [#allocation3], 0  ;;  %s741_s0 = inlined_call_operand.hbm [shape: f32[8,32], index: 0, kind: input, shape index: {}]   ;;  %s742_s1 = inlined_call_operand.hbm [shape: f32[32,128], index: 1, kind: input, shape index: {}]   ;;  %s743_s2 = inlined_call_operand.vmem [shape: f32[1,128], index: 2, kind: input, shape index: {}]   ;;  %s744_s3 = inlined_call_operand.hbm [shape: f32[128,128], index: 3, kind: input, shape index: {}]   ;;  %s745_s4 = inlined_call_operand.vmem [shape: f32[1,128], index: 4, kind: input, shape index: {}]   ;;  %s746_s5 = inlined_call_operand.hbm [shape: f32[128,128], index: 5, kind: input, shape index: {}]   ;;  %s747_s6 = inlined_call_operand.vmem [shape: f32[1,128], index: 6, kind: input, shape index: {}]   ;;  %s748_s7 = inlined_call_operand.hbm [shape: f32[8,128], index: 7, kind: output, shape index: {}]  }
   0x1   :  { %13 = vsyncpa [#allocation6], 0 }
   0x2   :  { %14 = vsyncpa [#allocation9], 0 }
   0x3   :  { %15 = vsyncpa [#allocation4], 0  ;;  %s617_s24 = smov [#allocation5]  }
   0x4   :  { %s31_s25 = sshll.u32 %s617_s24, 4  ;;  %s32_s25 = int_to_ptr.vmem [resolvable:$true] %s31_s25 }
   0x5   :  { %s517_s26 = scalar_lea.vmem %s32_s25, 512  ;;  %p522_p1 = scmp.lt.s32.totalorder %s32_s25, %s32_s25 }
   0x6   :  { %p518_p0 = scmp.ne.s32.totalorder %s32_s25, %s517_s26  ;;  %p523_p2 = scmp.lt.s32.totalorder %s517_s26, %s517_s26 }
   0x8   :  { %p524_p3 = por %p523_p2, %p522_p1 }
   0xa   :  { %p525_p4 = pnand %p524_p3, %p518_p0 }
   0xc   :  { %528 = shalt.err (!%p525_p4)
}
   0xd   :  { %s618_s27 = smov 128   ;;  %s619_s28 = smov 8  }
   0xe   :  { %37 = dma.hbm_to_vmem [thread:$0]  %s742_s1, 512, %s32_s25, [#allocation6], %s618_s27, %s618_s27, %s619_s28  }
   0xf   :  { %s620_s8 = smov [#allocation2]   ;;  %s621_s10 = smov [#allocation7]  }
  0x10   :  { %s22_s9 = sshll.u32 %s620_s8, 4  ;;  %s45_s11 = sshll.u32 %s621_s10, 4  ;;  %s23_s9 = int_to_ptr.vmem [resolvable:$true] %s22_s9  ;;  %s46_s11 = int_to_ptr.vmem [resolvable:$true] %s45_s11 }
  0x11   :  { %s537_s12 = scalar_lea.vmem %s23_s9, 128  ;;  %p542_p6 = scmp.lt.s32.totalorder %s23_s9, %s23_s9 }
  0x12   :  { %p538_p5 = scmp.ne.s32.totalorder %s23_s9, %s537_s12  ;;  %p543_p7 = scmp.lt.s32.totalorder %s537_s12, %s537_s12 }
  0x14   :  { %p544_p8 = por %p543_p7, %p542_p6 }
  0x16   :  { %p545_p9 = pnand %p544_p8, %p538_p5 }
  0x18   :  { %548 = shalt.err (!%p545_p9)
}
  0x19   :  { %25 = dma.hbm_to_vmem [thread:$0]  %s741_s0, 128, %s23_s9, [#allocation3]  }
  0x1a   :  { %s557_s15 = scalar_lea.vmem %s46_s11, 2048  ;;  %p562_p11 = scmp.lt.s32.totalorder %s46_s11, %s46_s11 }
  0x1b   :  { %p558_p10 = scmp.ne.s32.totalorder %s46_s11, %s557_s15  ;;  %p563_p12 = scmp.lt.s32.totalorder %s557_s15, %s557_s15 }
  0x1d   :  { %p564_p13 = por %p563_p12, %p562_p11 }
  0x1f   :  { %p565_p0 = pnand %p564_p13, %p558_p10 }
  0x21   :  { %568 = shalt.err (!%p565_p0)
}
  0x22   :  { %51 = dma.hbm_to_vmem [thread:$0]  %s744_s3, 2048, %s46_s11, [#allocation6], %s618_s27, %s618_s27, %s619_s28  }
  0x23   :  { %s622_s17 = smov [#allocation8]  }
  0x24   :  { %s59_s18 = sshll.u32 %s622_s17, 4  ;;  %s60_s18 = int_to_ptr.vmem [resolvable:$true] %s59_s18 }
  0x25   :  { %s577_s19 = scalar_lea.vmem %s60_s18, 2048  ;;  %p582_p2 = scmp.lt.s32.totalorder %s60_s18, %s60_s18 }
  0x26   :  { %p578_p1 = scmp.ne.s32.totalorder %s60_s18, %s577_s19  ;;  %p583_p3 = scmp.lt.s32.totalorder %s577_s19, %s577_s19 }
  0x28   :  { %p584_p4 = por %p583_p3, %p582_p2 }
  0x2a   :  { %p585_p5 = pnand %p584_p4, %p578_p1 }
  0x2c   :  { %588 = shalt.err (!%p585_p5)
}
  0x2d   :  { %65 = dma.hbm_to_vmem [thread:$0]  %s746_s5, 2048, %s60_s18, [#allocation9], %s618_s27, %s618_s27, %s619_s28  }
  0x2e   :  { %609 = dma.done.wait [#allocation3], 128  }
  0x2f   :  { %610 = vsyncadd [#allocation3], 4294967168 }
  0x30   :  { %611 = dma.done.wait [#allocation6], 2560  }
  0x31   :  { %612 = vsyncadd [#allocation6], 4294964736 }
  0x32   :  { %613 = dma.done.wait [#allocation9], 2048  }
  0x33   :  { %614 = vsyncadd [#allocation9], 4294965248  ;;  %v623_v0 = vmov 0.0   ;;  %vm624_vm0 = vmmov 0   ;;  %v84_v1 = vld [vmem:[#allocation5 + $0x18] sm:$0xff]  ;;  %v83_v2 = vld [vmem:[#allocation5 + $0x10] sm:$0xff] }
  0x34   :  { %419 = vmatprep.subr.mxu0 %v623_v0  ;;  %427 = vmatprep.mubr.msk.f32.mxu0 %vm624_vm0, %v623_v0  ;;  %v184_v3 = vld [vmem:[#allocation7 + $0x78] sm:$0xff]  ;;  %v82_v4 = vld [vmem:[#allocation5 + $0x8] sm:$0xff]  ;;  %v183_v5 = vld [vmem:[#allocation7 + $0x70] sm:$0xff]  ;;  %vm92_vm1 = vcmask 261120   ;;  %s625_s24 = smov [#allocation10]  }
  0x35   :  { %430 = vmatprep.subr.mxu1 %v623_v0  ;;  %462 = vmatprep.mubr.msk.f32.mxu1 %vm624_vm0, %v623_v0  ;;  %v182_v6 = vld [vmem:[#allocation7 + $0x68] sm:$0xff]  ;;  %v81_v7 = vld [vmem:[#allocation5] sm:$0xff]  ;;  %v80_v8 = vld [vmem:[#allocation2] sm:$0xff]  ;;  %s365_s25 = sshll.u32 %s625_s24, 4  ;;  %s366_s25 = int_to_ptr.vmem [resolvable:$true] %s365_s25 }
  0x36   :  { %420 = vmatpush3.msra.mxu0 %v84_v1  ;;  %431 = vmatpush3.msra.mxu1 %v184_v3  ;;  %v181_v9 = vld [vmem:[#allocation7 + $0x60] sm:$0xff]  ;;  %v180_v10 = vld [vmem:[#allocation7 + $0x58] sm:$0xff]  ;;  %v179_v11 = vld [vmem:[#allocation7 + $0x50] sm:$0xff]  ;;  %s589_s26 = scalar_lea.vmem %s366_s25, 128  ;;  %p594_p7 = scmp.lt.s32.totalorder %s366_s25, %s366_s25 }
  0x37   :  { %421 = vmatprep.subr.mxu0 %v623_v0  ;;  %432 = vmatprep.subr.mxu1 %v623_v0  ;;  %v178_v12 = vld [vmem:[#allocation7 + $0x48] sm:$0xff]  ;;  %v177_v13 = vld [vmem:[#allocation7 + $0x40] sm:$0xff]  ;;  %v176_v14 = vld [vmem:[#allocation7 + $0x38] sm:$0xff]  ;;  %p590_p6 = scmp.ne.s32.totalorder %s366_s25, %s589_s26  ;;  %p595_p8 = scmp.lt.s32.totalorder %s589_s26, %s589_s26 }
  0x38   :  { %422 = vmatpush3.msra.mxu0 %v83_v2  ;;  %433 = vmatpush3.msra.mxu1 %v183_v5  ;;  %v175_v15 = vld [vmem:[#allocation7 + $0x30] sm:$0xff]  ;;  %v174_v16 = vld [vmem:[#allocation7 + $0x28] sm:$0xff]  ;;  %v173_v17 = vld [vmem:[#allocation7 + $0x20] sm:$0xff] }
  0x39   :  { %423 = vmatprep.subr.mxu0 %v623_v0  ;;  %434 = vmatprep.subr.mxu1 %v623_v0  ;;  %v172_v18 = vld [vmem:[#allocation7 + $0x18] sm:$0xff]  ;;  %v171_v19 = vld [vmem:[#allocation7 + $0x10] sm:$0xff]  ;;  %v170_v20 = vld [vmem:[#allocation7 + $0x8] sm:$0xff]  ;;  %p596_p9 = por %p595_p8, %p594_p7 }
  0x3a   :  { %424 = vmatpush3.msra.mxu0 %v82_v4  ;;  %435 = vmatpush3.msra.mxu1 %v182_v6  ;;  %v169_v21 = vld [vmem:[#allocation7] sm:$0xff]  ;;  %v280_v22 = vld [vmem:[#allocation8 + $0x78] sm:$0xff]  ;;  %v279_v23 = vld [vmem:[#allocation8 + $0x70] sm:$0xff] }
  0x3b   :  { %425 = vmatprep.subr.mxu0 %v623_v0  ;;  %436 = vmatprep.subr.mxu1 %v623_v0  ;;  %v278_v24 = vld [vmem:[#allocation8 + $0x68] sm:$0xff]  ;;  %v277_v25 = vld [vmem:[#allocation8 + $0x60] sm:$0xff]  ;;  %v276_v26 = vld [vmem:[#allocation8 + $0x58] sm:$0xff]  ;;  %p597_p10 = pnand %p596_p9, %p590_p6 }
  0x3c   :  { %426 = vmatpush3.msra.mxu0 %v81_v7  ;;  %437 = vmatpush3.msra.mxu1 %v181_v9  ;;  %v275_v27 = vld [vmem:[#allocation8 + $0x50] sm:$0xff]  ;;  %v274_v28 = vld [vmem:[#allocation8 + $0x48] sm:$0xff]  ;;  %v273_v29 = vld [vmem:[#allocation8 + $0x40] sm:$0xff] }
  0x3d   :  { %428 = vmatmul.mubr.msk.f32.vlgmr.msra.gmra.mxu0 %vm92_vm1, %v80_v8  ;;  %438 = vmatprep.subr.mxu1 %v623_v0  ;;  %v272_v30 = vld [vmem:[#allocation8 + $0x38] sm:$0xff]  ;;  %v271_v31 = vld [vmem:[#allocation8 + $0x30] sm:$0xff]  ;;  %v270_v32 = vld [vmem:[#allocation8 + $0x28] sm:$0xff] }
  0x3e   :  { %465 = vmatprep.subr.mxu0 %v623_v0  ;;  %439 = vmatpush3.msra.mxu1 %v180_v10  ;;  %v269_v33 = vld [vmem:[#allocation8 + $0x20] sm:$0xff]  ;;  %v268_v34 = vld [vmem:[#allocation8 + $0x18] sm:$0xff]  ;;  %v267_v41 = vld [vmem:[#allocation8 + $0x10] sm:$0xff] }
  0x3f   :  { %497 = vmatprep.mubr.msk.f32.mxu0 %vm624_vm0, %v623_v0  ;;  %440 = vmatprep.subr.mxu1 %v623_v0  ;;  %v376_v35 = vld [vmem:[%s743_s2] ss:$0 sm:$0xff]  ;;  %v266_v42 = vld [vmem:[#allocation8 + $0x8] sm:$0xff]  ;;  %v265_v43 = vld [vmem:[#allocation8] sm:$0xff] }
  0x40   :  { %441 = vmatpush3.msra.mxu1 %v179_v11  ;;  %466 = vmatpush3.msra.mxu0 %v280_v22  ;;  %v378_v44 = vld [vmem:[%s745_s4] ss:$0 sm:$0xff] }
  0x41   :  { %442 = vmatprep.subr.mxu1 %v623_v0  ;;  %467 = vmatprep.subr.mxu0 %v623_v0  ;;  %v379_v50 = vld [vmem:[%s747_s6] ss:$0 sm:$0xff] }
  0x42   :  { %443 = vmatpush3.msra.mxu1 %v178_v12  ;;  %468 = vmatpush3.msra.mxu0 %v279_v23 }
  0x43   :  { %444 = vmatprep.subr.mxu1 %v623_v0  ;;  %469 = vmatprep.subr.mxu0 %v623_v0 }
  0x44   :  { %445 = vmatpush3.msra.mxu1 %v177_v13  ;;  %470 = vmatpush3.msra.mxu0 %v278_v24 }
  0x45   :  { %446 = vmatprep.subr.mxu1 %v623_v0  ;;  %471 = vmatprep.subr.mxu0 %v623_v0 }
  0x46   :  { %447 = vmatpush3.msra.mxu1 %v176_v14  ;;  %472 = vmatpush3.msra.mxu0 %v277_v25 }
  0x47   :  { %448 = vmatprep.subr.mxu1 %v623_v0  ;;  %473 = vmatprep.subr.mxu0 %v623_v0 }
  0x48   :  { %449 = vmatpush3.msra.mxu1 %v175_v15  ;;  %474 = vmatpush3.msra.mxu0 %v276_v26 }
  0x49   :  { %450 = vmatprep.subr.mxu1 %v623_v0  ;;  %475 = vmatprep.subr.mxu0 %v623_v0 }
  0x4a   :  { %451 = vmatpush3.msra.mxu1 %v174_v16  ;;  %476 = vmatpush3.msra.mxu0 %v275_v27 }
  0x4b   :  { %452 = vmatprep.subr.mxu1 %v623_v0  ;;  %477 = vmatprep.subr.mxu0 %v623_v0 }
  0x4c   :  { %453 = vmatpush3.msra.mxu1 %v173_v17  ;;  %478 = vmatpush3.msra.mxu0 %v274_v28 }
  0x4d   :  { %454 = vmatprep.subr.mxu1 %v623_v0  ;;  %479 = vmatprep.subr.mxu0 %v623_v0 }
  0x4e   :  { %455 = vmatpush3.msra.mxu1 %v172_v18  ;;  %480 = vmatpush3.msra.mxu0 %v273_v29 }
  0x4f   :  { %456 = vmatprep.subr.mxu1 %v623_v0  ;;  %481 = vmatprep.subr.mxu0 %v623_v0 }
  0x50   :  { %457 = vmatpush3.msra.mxu1 %v171_v19  ;;  %482 = vmatpush3.msra.mxu0 %v272_v30 }
  0x51   :  { %458 = vmatprep.subr.mxu1 %v623_v0  ;;  %483 = vmatprep.subr.mxu0 %v623_v0 }
  0x52   :  { %459 = vmatpush3.msra.mxu1 %v170_v20  ;;  %484 = vmatpush3.msra.mxu0 %v271_v31 }
  0x53   :  { %460 = vmatprep.subr.mxu1 %v623_v0  ;;  %485 = vmatprep.subr.mxu0 %v623_v0 }
  0x54   :  { %461 = vmatpush3.msra.mxu1 %v169_v21  ;;  %486 = vmatpush3.msra.mxu0 %v270_v32 }
  0x55   :  { %487 = vmatprep.subr.mxu0 %v623_v0 }
  0x56   :  { %488 = vmatpush3.msra.mxu0 %v269_v33 }
  0x57   :  { %489 = vmatprep.subr.mxu0 %v623_v0 }
  0x58   :  { %490 = vmatpush3.msra.mxu0 %v268_v34 }
  0x59   :  { %491 = vmatprep.subr.mxu0 %v623_v0 }
  0x5a   :  { %492 = vmatpush3.msra.mxu0 %v267_v41 }
  0x5b   :  { %493 = vmatprep.subr.mxu0 %v623_v0 }
  0x5c   :  { %494 = vmatpush3.msra.mxu0 %v266_v42 }
  0x5d   :  { %495 = vmatprep.subr.mxu0 %v623_v0 }
  0x5e   :  { %496 = vmatpush3.msra.mxu0 %v265_v43 }
  0xfd   :  { %v162_v36 = vpop.f32.mrf.mxu0 }
  0xfe   :  { %v163_v37 = vadd.f32 %v376_v35, %v162_v36 }
  0xff   :  { %v429_v38 = vpop.f32.mrf.mxu0 }
 0x100   :  { %v167_v39 = vmul.f32 0.01, %v163_v37  ;;  %vm166_vm2 = vcmp.gt.f32.partialorder %v163_v37, 0.0 }
 0x102   :  { %v168_v40 = vsel %vm166_vm2, %v163_v37, %v167_v39 }
 0x103   :  { %463 = vmatmul.mubr.f32.vlgmr.msra.gmra.mxu1 %v168_v40 }
 0x1c3   :  { %v258_v45 = vpop.f32.mrf.mxu1 }
 0x1c4   :  { %v259_v46 = vadd.f32 %v378_v44, %v258_v45 }
 0x1c5   :  { %v464_v47 = vpop.f32.mrf.mxu1 }
 0x1c6   :  { %vm262_vm3 = vcmp.gt.f32.partialorder %v259_v46, 0.0  ;;  %v263_v48 = vmul.f32 0.01, %v259_v46 }
 0x1c8   :  { %v264_v49 = vsel %vm262_vm3, %v259_v46, %v263_v48 }
 0x1c9   :  { %498 = vmatmul.mubr.f32.vlgmr.msra.gmra.mxu0 %v264_v49 }
 0x289   :  { %v354_v51 = vpop.f32.mrf.mxu0 }
 0x28a   :  { %v355_v52 = vadd.f32 %v379_v50, %v354_v51 }
 0x28b   :  { %v499_v53 = vpop.f32.mrf.mxu0 }
 0x28c   :  { %358 = vst [vmem:[#allocation10] sm:$0xff] %v355_v52 }
 0x28d   :  { %600 = shalt.err (!%p597_p10)
}
 0x28e   :  { %368 = dma.vmem_to_hbm [thread:$0]  %s366_s25, 128, %s748_s7, [#allocation4]  }
 0x28f   :  { %615 = dma.done.wait [#allocation4], 128  }
 0x290   :  { %616 = vsyncadd [#allocation4], 4294967168 }
 0x291   :  { %372 = vsyncpa [#allocation3], 1 }
 0x292   :  { %373 = vsyncpa [#allocation6], 1 }
 0x293   :  { %374 = vsyncpa [#allocation9], 1 }
 0x294   :  { %375 = vsyncpa [#allocation4], 1 }

</bundles_post_ra>
